<compile_context>
chip_gen: v7x
topology: tpu7x:2x2x1
jax: 0.10.0
libtpu: 0.0.40
codegen_flags: <defaults>
</compile_context>

<pallas_src>
import functools

import jax
import jax.numpy as jnp
from jax.experimental import pallas as pl
from jax.experimental.pallas import tpu as pltpu


def _round_up(x, m):
    return (x + m - 1) // m * m


def _rgcn_kernel(x_ref, wf_ref, wb_ref, af_ref, ab_ref, wl_ref, bias_ref,
                 out_ref, *, tn):
    """grid = (node row tiles [parallel], num_rels [arbitrary, innermost])."""
    i = pl.program_id(0)
    r = pl.program_id(1)

    # Initialize the resident output tile with the self-loop message plus the
    # pre-folded bias term (s_bias + c_fwd*f_bias + c_bwd*b_bias).
    @pl.when(r == 0)
    def _():
        row0 = pl.multiple_of(i * tn, tn)
        x_tile = x_ref[pl.ds(row0, tn), :]
        self_msg = jnp.dot(x_tile, wl_ref[...],
                           preferred_element_type=jnp.float32)
        out_ref[...] = 2.0 * self_msg + bias_ref[...]

    # (A_r_tile @ X) @ W_r: contract over N first so X @ W_r is never recomputed
    # per row tile; then a single fused read-modify-write of the output tile.
    zf = jnp.dot(af_ref[0], x_ref[...], preferred_element_type=jnp.float32)
    zb = jnp.dot(ab_ref[0], x_ref[...], preferred_element_type=jnp.float32)
    out_ref[...] += (
        jnp.dot(zf.astype(wf_ref.dtype), wf_ref[0],
                preferred_element_type=jnp.float32)
        + jnp.dot(zb.astype(wb_ref.dtype), wb_ref[0],
                  preferred_element_type=jnp.float32))


@jax.jit
def rel_graph_conv(x, wf, wb, a_fwd, a_bwd, w_loop,
                   f_bias, b_bias, s_bias, c_fwd, c_bwd):
    n, in_feat = x.shape
    num_rels, _, out_feat = wf.shape

    # Fold all constant bias contributions into one [N, out_feat] array.
    bias_term = jnp.broadcast_to(s_bias + c_fwd * f_bias + c_bwd * b_bias,
                                 (n, out_feat)).astype(jnp.float32)

    # Guard: empty relation set => empty grid would leave the output undefined.
    if num_rels == 0:
        return 2.0 * (x @ w_loop) + bias_term

    # Lane-dense feature padding (multiples of 128).
    in_pad = _round_up(in_feat, 128)
    out_pad = _round_up(out_feat, 128)

    # Node-row tile: as large as possible while double-buffered A row-tiles
    # (both directions), the resident X slab, weights and the output tile stay
    # inside a conservative VMEM budget (sized for v7x's 64 MiB VMEM).
    vmem_budget = 40 * 1024 * 1024

    def footprint(tn_):
        n_ = _round_up(n, tn_)
        a_tiles = 2 * 2 * 2 * tn_ * n_ * 4            # 2 dirs x 2 buffers
        x_full = 2 * n_ * in_pad * 4
        w_tiles = (2 * 2 + 1) * in_pad * out_pad * 4  # Wf/Wb dbl-buffered + W_loop
        io = 2 * 2 * tn_ * out_pad * 4                # bias tile + out tile
        return a_tiles + x_full + w_tiles + io

    tn = 256
    while tn > 8 and (tn > _round_up(n, 8) or footprint(tn) > vmem_budget):
        tn //= 2
    n_pad = _round_up(n, tn)

    # Zero-pad everything (padded rows/cols contribute exact zeros).
    x_p = jnp.pad(x.astype(jnp.float32),
                  ((0, n_pad - n), (0, in_pad - in_feat)))
    wf_p = jnp.pad(wf.astype(jnp.float32),
                   ((0, 0), (0, in_pad - in_feat), (0, out_pad - out_feat)))
    wb_p = jnp.pad(wb.astype(jnp.float32),
                   ((0, 0), (0, in_pad - in_feat), (0, out_pad - out_feat)))
    wl_p = jnp.pad(w_loop.astype(jnp.float32),
                   ((0, in_pad - in_feat), (0, out_pad - out_feat)))
    af_p = jnp.pad(a_fwd.astype(jnp.float32),
                   ((0, 0), (0, n_pad - n), (0, n_pad - n)))
    ab_p = jnp.pad(a_bwd.astype(jnp.float32),
                   ((0, 0), (0, n_pad - n), (0, n_pad - n)))
    bias_p = jnp.pad(bias_term, ((0, n_pad - n), (0, out_pad - out_feat)))

    grid = (n_pad // tn, num_rels)

    flops = (2 * num_rels * (2 * n_pad * n_pad * in_pad
                             + 2 * n_pad * in_pad * out_pad)
             + 2 * n_pad * in_pad * out_pad)
    bytes_accessed = (2 * num_rels * n_pad * n_pad * 4
                      + (2 * num_rels + 1) * in_pad * out_pad * 4
                      + n_pad * in_pad * 4
                      + 2 * n_pad * out_pad * 4)
    cost = pl.CostEstimate(flops=flops, transcendentals=0,
                           bytes_accessed=bytes_accessed)

    vmem_limit = int(min(max(footprint(tn) + (8 << 20), 32 << 20), 64 << 20))

    grid_spec = pltpu.PrefetchScalarGridSpec(
        num_scalar_prefetch=0,
        grid=grid,
        in_specs=[
            pl.BlockSpec((n_pad, in_pad), lambda i, r: (0, 0)),          # X (resident)
            pl.BlockSpec((1, in_pad, out_pad), lambda i, r: (r, 0, 0)),  # Wf[r]
            pl.BlockSpec((1, in_pad, out_pad), lambda i, r: (r, 0, 0)),  # Wb[r]
            pl.BlockSpec((1, tn, n_pad), lambda i, r: (r, i, 0)),        # A_fwd rows
            pl.BlockSpec((1, tn, n_pad), lambda i, r: (r, i, 0)),        # A_bwd rows
            pl.BlockSpec((in_pad, out_pad), lambda i, r: (0, 0)),        # W_loop
            pl.BlockSpec((tn, out_pad), lambda i, r: (i, 0)),            # folded bias
        ],
        out_specs=pl.BlockSpec((tn, out_pad), lambda i, r: (i, 0)),
    )

    out_p = pl.pallas_call(
        functools.partial(_rgcn_kernel, tn=tn),
        out_shape=jax.ShapeDtypeStruct((n_pad, out_pad), jnp.float32),
        grid_spec=grid_spec,
        compiler_params=pltpu.CompilerParams(
            dimension_semantics=("parallel", "arbitrary"),
            vmem_limit_bytes=vmem_limit),
        cost_estimate=cost,
    )(x_p, wf_p, wb_p, af_p, ab_p, wl_p, bias_p)

    return out_p[:n, :out_feat]


def build_graph_operators(src, dst, etypes, num_nodes, num_rels):
    """Glue: turn the edge list into dense per-relation aggregation matrices."""
    f32 = jnp.float32

    in_deg = jnp.zeros((num_nodes,), f32).at[dst].add(1.0)
    out_deg = jnp.zeros((num_nodes,), f32).at[src].add(1.0)
    norm_fwd = jnp.where(in_deg[dst] > 0, 1.0 / in_deg[dst], 0.0)    # [E]
    norm_bwd = jnp.where(out_deg[src] > 0, 1.0 / out_deg[src], 0.0)  # [E]

    oh_rel = (etypes[:, None] == jnp.arange(num_rels)[None, :]).astype(f32)  # [E,R]
    oh_src = jax.nn.one_hot(src, num_nodes, dtype=f32)                        # [E,N]
    oh_dst = jax.nn.one_hot(dst, num_nodes, dtype=f32)                        # [E,N]

    # A_fwd[r, dst, src] = sum norm_fwd ;  A_bwd[r, src, dst] = sum norm_bwd
    a_fwd = jnp.einsum('er,ed,es->rds', oh_rel, oh_dst * norm_fwd[:, None], oh_src)
    a_bwd = jnp.einsum('er,es,ed->rsd', oh_rel, oh_src * norm_bwd[:, None], oh_dst)

    c_fwd = (oh_dst * norm_fwd[:, None]).sum(0)[:, None]   # [N,1]
    c_bwd = (oh_src * norm_bwd[:, None]).sum(0)[:, None]   # [N,1]
    return a_fwd, a_bwd, c_fwd, c_bwd, norm_fwd, norm_bwd


def reference(x, src, dst, etypes, wf, wb, w_loop, f_bias, b_bias, s_bias,
              norm_fwd, norm_bwd, num_nodes):
    """Pure-JAX reference reproducing the PyTorch/DGL forward."""
    m_fwd = jnp.einsum('ei,eio->eo', x[src], wf[etypes]) + f_bias
    m_fwd = m_fwd * norm_fwd[:, None]
    m_forward = jnp.zeros((num_nodes, wf.shape[-1]), jnp.float32).at[dst].add(m_fwd)

    m_bwd = jnp.einsum('ei,eio->eo', x[dst], wb[etypes]) + b_bias
    m_bwd = m_bwd * norm_bwd[:, None]
    m_backward = jnp.zeros((num_nodes, wb.shape[-1]), jnp.float32).at[src].add(m_bwd)

    self_loop = x @ w_loop
    self_loop = 2.0 * self_loop + s_bias   # `self_loop += self_loop + bias` in torch
    return self_loop + m_forward + m_backward


if __name__ == "__main__":
    key = jax.random.PRNGKey(0)
    k_x, k_wf, k_wb, k_wl, k_src, k_dst, k_et = jax.random.split(key, 7)

    num_nodes = 16
    num_edges = 24
    in_feat = 32
    out_feat = 32
    num_rels = 3

    x = jax.random.normal(k_x, (num_nodes, in_feat), jnp.float32)
    src = jax.random.randint(k_src, (num_edges,), 0, num_nodes)
    dst = jax.random.randint(k_dst, (num_edges,), 0, num_nodes)
    etypes = jax.random.randint(k_et, (num_edges,), 0, num_rels)

    # Parameters (mirrors __init__ shapes; biases init to zero).
    wf = jax.random.normal(k_wf, (num_rels, in_feat, out_feat), jnp.float32) * 0.1
    wb = jax.random.normal(k_wb, (num_rels, in_feat, out_feat), jnp.float32) * 0.1
    w_loop = jax.random.normal(k_wl, (in_feat, out_feat), jnp.float32)  # N(0,1)
    f_bias = jnp.zeros((1, out_feat), jnp.float32)
    b_bias = jnp.zeros((1, out_feat), jnp.float32)
    s_bias = jnp.zeros((1, out_feat), jnp.float32)

    a_fwd, a_bwd, c_fwd, c_bwd, norm_fwd, norm_bwd = build_graph_operators(
        src, dst, etypes, num_nodes, num_rels)

    out = rel_graph_conv(x, wf, wb, a_fwd, a_bwd, w_loop,
                         f_bias, b_bias, s_bias, c_fwd, c_bwd)
    out = jax.block_until_ready(out)

    ref = reference(x, src, dst, etypes, wf, wb, w_loop,
                    f_bias[0], b_bias[0], s_bias[0],
                    norm_fwd, norm_bwd, num_nodes)
    assert out.shape == (num_nodes, out_feat)
    assert jnp.allclose(out, ref, rtol=1e-4, atol=1e-4), "mismatch vs reference"
    print("KERNEL_OK")
</pallas_src>

<mosaic_0001>
module attributes {stable_mosaic.version = 11 : i64} {
  func.func @_rgcn_kernel(%arg0: i32, %arg1: i32, %arg2: memref<16x128xf32, #tpu.memory_space<vmem>>, %arg3: memref<1x128x128xf32, #tpu.memory_space<vmem>>, %arg4: memref<1x128x128xf32, #tpu.memory_space<vmem>>, %arg5: memref<1x16x16xf32, #tpu.memory_space<vmem>>, %arg6: memref<1x16x16xf32, #tpu.memory_space<vmem>>, %arg7: memref<128x128xf32, #tpu.memory_space<vmem>>, %arg8: memref<16x128xf32, #tpu.memory_space<vmem>>, %arg9: memref<16x128xf32, #tpu.memory_space<vmem>>) attributes {dimension_semantics = [#tpu.dimension_semantics<parallel>, #tpu.dimension_semantics<arbitrary>], iteration_bounds = array<i64: 1, 3>, scalar_prefetch = 0 : i64, scratch_operands = 0 : i64, tpu.core_type = #tpu.core_type<tc>, window_params = [{pipeline_mode = #tpu.pipeline_mode<synchronous>, transform_indices = @transform_0, window_bounds = array<i64: 16, 128>}, {transform_indices = @transform_1, window_bounds = array<i64: 1, 128, 128>}, {transform_indices = @transform_2, window_bounds = array<i64: 1, 128, 128>}, {transform_indices = @transform_3, window_bounds = array<i64: 1, 16, 16>}, {transform_indices = @transform_4, window_bounds = array<i64: 1, 16, 16>}, {pipeline_mode = #tpu.pipeline_mode<synchronous>, transform_indices = @transform_5, window_bounds = array<i64: 128, 128>}, {transform_indices = @transform_6, window_bounds = array<i64: 16, 128>}, {transform_indices = @transform_7, window_bounds = array<i64: 16, 128>}]} {
    %c0_i32 = arith.constant 0 : i32
    %0 = arith.cmpi eq, %arg1, %c0_i32 : i32
    %1 = arith.extui %0 : i1 to i32
    %c0_i32_0 = arith.constant 0 : i32
    %2 = arith.cmpi ne, %1, %c0_i32_0 : i32
    scf.if %2 {
      %c16_i32 = arith.constant 16 : i32
      %21 = arith.muli %arg0, %c16_i32 : i32
      %22 = tpu.assume_multiple %21, 16 : i32
      %23 = arith.index_cast %22 : i32 to index
      %c0_23 = arith.constant 0 : index
      %24 = vector.load %arg2[%23, %c0_23] : memref<16x128xf32, #tpu.memory_space<vmem>>, vector<16x128xf32>
      %c0_24 = arith.constant 0 : index
      %c0_25 = arith.constant 0 : index
      %25 = vector.load %arg7[%c0_24, %c0_25] : memref<128x128xf32, #tpu.memory_space<vmem>>, vector<128x128xf32>
      %cst_26 = arith.constant dense<0.000000e+00> : vector<16x128xf32>
      %26 = tpu.matmul %24, %25, %cst_26 {dimension_numbers = #tpu.dot_dimension_numbers<[1], [0], [0], [1], [0, 0, 1, 1], [], []>} : vector<16x128xf32>, vector<128x128xf32>, vector<16x128xf32> -> vector<16x128xf32>
      %cst_27 = arith.constant 2.000000e+00 : f32
      %27 = vector.broadcast %cst_27 : f32 to vector<16x128xf32>
      %28 = arith.mulf %27, %26 : vector<16x128xf32>
      %c0_28 = arith.constant 0 : index
      %c0_29 = arith.constant 0 : index
      %29 = vector.load %arg8[%c0_28, %c0_29] : memref<16x128xf32, #tpu.memory_space<vmem>>, vector<16x128xf32>
      %30 = arith.addf %28, %29 : vector<16x128xf32>
      %c0_30 = arith.constant 0 : index
      %c0_31 = arith.constant 0 : index
      %31 = vector.load %arg9[%c0_30, %c0_31] : memref<16x128xf32, #tpu.memory_space<vmem>>, vector<16x128xf32>
      tpu.vector_store %arg9[%c0_30, %c0_31], %30 {strides = array<i32>} : memref<16x128xf32, #tpu.memory_space<vmem>>, vector<16x128xf32>,
    } else {
    }
    %c0 = arith.constant 0 : index
    %c0_1 = arith.constant 0 : index
    %c0_2 = arith.constant 0 : index
    %3 = vector.load %arg5[%c0, %c0_1, %c0_2] : memref<1x16x16xf32, #tpu.memory_space<vmem>>, vector<1x16x16xf32>
    %4 = vector.shape_cast %3 : vector<1x16x16xf32> to vector<16x16xf32>
    %c0_3 = arith.constant 0 : index
    %c0_4 = arith.constant 0 : index
    %5 = vector.load %arg2[%c0_3, %c0_4] : memref<16x128xf32, #tpu.memory_space<vmem>>, vector<16x128xf32>
    %cst = arith.constant dense<0.000000e+00> : vector<16x128xf32>
    %6 = tpu.matmul %4, %5, %cst {dimension_numbers = #tpu.dot_dimension_numbers<[1], [0], [0], [1], [0, 0, 1, 1], [], []>} : vector<16x16xf32>, vector<16x128xf32>, vector<16x128xf32> -> vector<16x128xf32>
    %c0_5 = arith.constant 0 : index
    %c0_6 = arith.constant 0 : index
    %c0_7 = arith.constant 0 : index
    %7 = vector.load %arg6[%c0_5, %c0_6, %c0_7] : memref<1x16x16xf32, #tpu.memory_space<vmem>>, vector<1x16x16xf32>
    %8 = vector.shape_cast %7 : vector<1x16x16xf32> to vector<16x16xf32>
    %c0_8 = arith.constant 0 : index
    %c0_9 = arith.constant 0 : index
    %9 = vector.load %arg2[%c0_8, %c0_9] : memref<16x128xf32, #tpu.memory_space<vmem>>, vector<16x128xf32>
    %cst_10 = arith.constant dense<0.000000e+00> : vector<16x128xf32>
    %10 = tpu.matmul %8, %9, %cst_10 {dimension_numbers = #tpu.dot_dimension_numbers<[1], [0], [0], [1], [0, 0, 1, 1], [], []>} : vector<16x16xf32>, vector<16x128xf32>, vector<16x128xf32> -> vector<16x128xf32>
    %c0_11 = arith.constant 0 : index
    %c0_12 = arith.constant 0 : index
    %11 = vector.load %arg9[%c0_11, %c0_12] : memref<16x128xf32, #tpu.memory_space<vmem>>, vector<16x128xf32>
    %c0_13 = arith.constant 0 : index
    %c0_14 = arith.constant 0 : index
    %c0_15 = arith.constant 0 : index
    %12 = vector.load %arg3[%c0_13, %c0_14, %c0_15] : memref<1x128x128xf32, #tpu.memory_space<vmem>>, vector<1x128x128xf32>
    %13 = vector.shape_cast %12 : vector<1x128x128xf32> to vector<128x128xf32>
    %cst_16 = arith.constant dense<0.000000e+00> : vector<16x128xf32>
    %14 = tpu.matmul %6, %13, %cst_16 {dimension_numbers = #tpu.dot_dimension_numbers<[1], [0], [0], [1], [0, 0, 1, 1], [], []>} : vector<16x128xf32>, vector<128x128xf32>, vector<16x128xf32> -> vector<16x128xf32>
    %c0_17 = arith.constant 0 : index
    %c0_18 = arith.constant 0 : index
    %c0_19 = arith.constant 0 : index
    %15 = vector.load %arg4[%c0_17, %c0_18, %c0_19] : memref<1x128x128xf32, #tpu.memory_space<vmem>>, vector<1x128x128xf32>
    %16 = vector.shape_cast %15 : vector<1x128x128xf32> to vector<128x128xf32>
    %cst_20 = arith.constant dense<0.000000e+00> : vector<16x128xf32>
    %17 = tpu.matmul %10, %16, %cst_20 {dimension_numbers = #tpu.dot_dimension_numbers<[1], [0], [0], [1], [0, 0, 1, 1], [], []>} : vector<16x128xf32>, vector<128x128xf32>, vector<16x128xf32> -> vector<16x128xf32>
    %18 = arith.addf %14, %17 : vector<16x128xf32>
    %19 = arith.addf %11, %18 : vector<16x128xf32>
    %c0_21 = arith.constant 0 : index
    %c0_22 = arith.constant 0 : index
    %20 = vector.load %arg9[%c0_21, %c0_22] : memref<16x128xf32, #tpu.memory_space<vmem>>, vector<16x128xf32>
    tpu.vector_store %arg9[%c0_21, %c0_22], %19 {strides = array<i32>} : memref<16x128xf32, #tpu.memory_space<vmem>>, vector<16x128xf32>,
    return
  }
  func.func @transform_0(%arg0: i32, %arg1: i32) -> (i32, i32) {
    %c0_i32 = arith.constant 0 : i32
    %c0_i32_0 = arith.constant 0 : i32
    %c0_i32_1 = arith.constant 0 : i32
    return %c0_i32, %c0_i32_0 : i32, i32
  }
  func.func @transform_1(%arg0: i32, %arg1: i32) -> (i32, i32, i32) {
    %c0_i32 = arith.constant 0 : i32
    %c0_i32_0 = arith.constant 0 : i32
    %c0_i32_1 = arith.constant 0 : i32
    return %arg1, %c0_i32, %c0_i32_0 : i32, i32, i32
  }
  func.func @transform_2(%arg0: i32, %arg1: i32) -> (i32, i32, i32) {
    %c0_i32 = arith.constant 0 : i32
    %c0_i32_0 = arith.constant 0 : i32
    %c0_i32_1 = arith.constant 0 : i32
    return %arg1, %c0_i32, %c0_i32_0 : i32, i32, i32
  }
  func.func @transform_3(%arg0: i32, %arg1: i32) -> (i32, i32, i32) {
    %c0_i32 = arith.constant 0 : i32
    %c0_i32_0 = arith.constant 0 : i32
    return %arg1, %arg0, %c0_i32 : i32, i32, i32
  }
  func.func @transform_4(%arg0: i32, %arg1: i32) -> (i32, i32, i32) {
    %c0_i32 = arith.constant 0 : i32
    %c0_i32_0 = arith.constant 0 : i32
    return %arg1, %arg0, %c0_i32 : i32, i32, i32
  }
  func.func @transform_5(%arg0: i32, %arg1: i32) -> (i32, i32) {
    %c0_i32 = arith.constant 0 : i32
    %c0_i32_0 = arith.constant 0 : i32
    %c0_i32_1 = arith.constant 0 : i32
    return %c0_i32, %c0_i32_0 : i32, i32
  }
  func.func @transform_6(%arg0: i32, %arg1: i32) -> (i32, i32) {
    %c0_i32 = arith.constant 0 : i32
    %c0_i32_0 = arith.constant 0 : i32
    return %arg0, %c0_i32 : i32, i32
  }
  func.func @transform_7(%arg0: i32, %arg1: i32) -> (i32, i32) {
    %c0_i32 = arith.constant 0 : i32
    %c0_i32_0 = arith.constant 0 : i32
    return %arg0, %c0_i32 : i32, i32
  }
}

</mosaic_0001>

<bundles_post_ra>
// kernel: rel_graph_conv.1
= control target key start
LH: loop header
LB: loop body
LE: loop exit
PB: predicated region body
PF: predicated region fallthrough
CT: control target
= control target key end

     0   :  { %12 = vsyncpa [#allocation3], 0  ;;  %s1431_s24 = smov 0   ;;  %s1433_s25 = smov 0   ;;  %s1613_s0 = inlined_call_operand.vmem [shape: f32[16,128], index: 0, kind: input, shape index: {}]   ;;  %s1614_s1 = inlined_call_operand.vmem [shape: f32[3,128,128], index: 1, kind: input, shape index: {}]   ;;  %s1615_s2 = inlined_call_operand.vmem [shape: f32[3,128,128], index: 2, kind: input, shape index: {}]   ;;  %s1616_s3 = inlined_call_operand.vmem [shape: f32[3,16,16], index: 3, kind: input, shape index: {}]   ;;  %s1617_s4 = inlined_call_operand.vmem [shape: f32[3,16,16], index: 4, kind: input, shape index: {}]   ;;  %s1618_s5 = inlined_call_operand.vmem [shape: f32[128,128], index: 5, kind: input, shape index: {}]   ;;  %s1619_s6 = inlined_call_operand.vmem [shape: f32[16,128], index: 6, kind: input, shape index: {}]   ;;  %s1620_s7 = inlined_call_operand.hbm [shape: f32[16,128], index: 7, kind: output, shape index: {}]  }
   0x1   :  { %s1435_s26 = smov 0  }
   0x2 LB: > { %s988_s27 = sadd.s32 4294967295, %s1386_s26   ;;  %s27_s28 = sadd.s32 1, %s1382_s25  ;;  %s1386_s26 = sphi %s1435_s26, %s18_s26   ;;  %s1382_s25 = sphi %s1433_s25, %s1623_s25   ;;  %s1378_s24 = sphi %s1431_s24, %s1622_s24  }
   0x3   : > { %p28_p0 = scmp.ge.s32.totalorder %s27_s28, 3  ;;  %p992_p1 = scmp.ge.s32.totalorder %s1386_s26, 1 }
   0x4   : > { %p305_p2 = scmp.lt.s32.totalorder %s1386_s26, 4 }
   0x5   : > { %s1625_s28 = smov (%p28_p0, %s27_s28), 0 }
   0x6   : > { %p306_p3 = pnand %p992_p1, %p305_p2 }
   0x7   : > { %p360_p4 = scmp.lt.s32.totalorder (!%p306_p3), %s1378_s24, 2  ;;  %p1001_p5 = scmp.ne.s32.totalorder (!%p306_p3), %s1378_s24, 0 }
   0x8   : > { %309 = sbr.rel (%p306_p3) target bundleno = 724 (0x2d4), region = 48 }
   0xf   : > { %s361_s29 = scalar_select %p360_p4, %s1378_s24, 2 }
  0x10   : > { %400 = sbr.rel (%p1001_p5) target bundleno = 269 (0x10d), region = 52  ;;  %v405_v0 = vld [vmem:[%s1618_s5] sm:$0xff] (!%p1001_p5)  ;;  %v406_v1 = vld [vmem:[%s1618_s5 + $0x8] sm:$0xff] (!%p1001_p5)  ;;  %v407_v2 = vld [vmem:[%s1618_s5 + $0x10] sm:$0xff] (!%p1001_p5) }
  0x11   : > { %s1010_s30 = sshll.u32 %s361_s29, 7  ;;  %s1012_s8 = sshll.u32 %s361_s29, 4  ;;  %v1195_v3 = vpack.c.bf16 (!%p1001_p5), %v406_v1, %v405_v0  ;;  %v408_v4 = vld [vmem:[%s1618_s5 + $0x18] sm:$0xff] (!%p1001_p5)  ;;  %v409_v6 = vld [vmem:[%s1618_s5 + $0x20] sm:$0xff] (!%p1001_p5)  ;;  %v410_v7 = vld [vmem:[%s1618_s5 + $0x28] sm:$0xff] (!%p1001_p5) }
  0x12   : > { %s1453_s11 = scalar_lea.vmem %s1614_s1, %s1010_s30  ;;  %s1458_s14 = scalar_lea.vmem %s1615_s2, %s1010_s30  ;;  %v1199_v5 = vpack.c.bf16 (!%p1001_p5), %v408_v4, %v407_v2  ;;  %v1203_v8 = vpack.c.bf16 (!%p1001_p5), %v410_v7, %v409_v6  ;;  %v403_v9 = vld [vmem:[%s1613_s0] sm:$0xff] (!%p1001_p5)  ;;  %v411_v10 = vld [vmem:[%s1618_s5 + $0x30] sm:$0xff] (!%p1001_p5)  ;;  %v412_v11 = vld [vmem:[%s1618_s5 + $0x38] sm:$0xff] (!%p1001_p5) }
  0x13   : > { %s1463_s17 = scalar_lea.vmem %s1616_s3, %s1012_s8  ;;  %s1468_s20 = scalar_lea.vmem %s1617_s4, %s1012_s8  ;;  %1196 = vmatprep.subr.bf16.mxu0 (!%p1001_p5), %v1195_v3  ;;  %1108 = vmatprep.mubr.f32.mxu0 (!%p1001_p5), %v403_v9  ;;  %v1207_v12 = vpack.c.bf16 (!%p1001_p5), %v412_v11, %v411_v10  ;;  %v413_v13 = vld [vmem:[%s1618_s5 + $0x40] sm:$0xff] (!%p1001_p5)  ;;  %v414_v14 = vld [vmem:[%s1618_s5 + $0x48] sm:$0xff] (!%p1001_p5)  ;;  %v415_v16 = vld [vmem:[%s1618_s5 + $0x50] sm:$0xff] (!%p1001_p5) }
  0x14   : > { %1198 = vmatpush3.bf16.msra.mxu0 (!%p1001_p5), %v1195_v3  ;;  %v1211_v15 = vpack.c.bf16 (!%p1001_p5), %v414_v14, %v413_v13  ;;  %v416_v17 = vld [vmem:[%s1618_s5 + $0x58] sm:$0xff] (!%p1001_p5)  ;;  %v417_v19 = vld [vmem:[%s1618_s5 + $0x60] sm:$0xff] (!%p1001_p5)  ;;  %v418_v20 = vld [vmem:[%s1618_s5 + $0x68] sm:$0xff] (!%p1001_p5) }
  0x15   : > { %1200 = vmatprep.subr.bf16.mxu0 (!%p1001_p5), %v1199_v5  ;;  %v1215_v18 = vpack.c.bf16 (!%p1001_p5), %v416_v17, %v415_v16  ;;  %v1219_v21 = vpack.c.bf16 (!%p1001_p5), %v418_v20, %v417_v19  ;;  %v419_v22 = vld [vmem:[%s1618_s5 + $0x70] sm:$0xff] (!%p1001_p5)  ;;  %v420_v23 = vld [vmem:[%s1618_s5 + $0x78] sm:$0xff] (!%p1001_p5)  ;;  %v404_v25 = vld [vmem:[%s1613_s0 + $0x8] sm:$0xff] (!%p1001_p5) }
  0x16   : > { %v1223_v24 = vpack.c.bf16 (!%p1001_p5), %v420_v23, %v419_v22  ;;  %v499_v27 = vld [vmem:[%s1619_s6 + $0x8] sm:$0xff] (!%p1001_p5)  ;;  %v498_v30 = vld [vmem:[%s1619_s6] sm:$0xff] (!%p1001_p5) }
  0x18   : > { %1202 = vmatpush3.bf16.msra.mxu0 %v1199_v5 }
  0x19   : > { %1204 = vmatprep.subr.bf16.mxu0 %v1203_v8 }
  0x1c   : > { %1206 = vmatpush3.bf16.msra.mxu0 %v1203_v8 }
  0x1d   : > { %1208 = vmatprep.subr.bf16.mxu0 %v1207_v12 }
  0x20   : > { %1210 = vmatpush3.bf16.msra.mxu0 %v1207_v12 }
  0x21   : > { %1212 = vmatprep.subr.bf16.mxu0 %v1211_v15 }
  0x24   : > { %1214 = vmatpush3.bf16.msra.mxu0 %v1211_v15 }
  0x25   : > { %1216 = vmatprep.subr.bf16.mxu0 %v1215_v18 }
  0x28   : > { %1218 = vmatpush3.bf16.msra.mxu0 %v1215_v18 }
  0x29   : > { %1220 = vmatprep.subr.bf16.mxu0 %v1219_v21 }
  0x2c   : > { %1222 = vmatpush3.bf16.msra.mxu0 %v1219_v21 }
  0x2d   : > { %1224 = vmatprep.subr.bf16.mxu0 %v1223_v24 }
  0x30   : > { %1226 = vmatpush3.bf16.msra.mxu0 %v1223_v24 }
  0x33   : > { %1109 = vmatmul.mubr.f32.vlgmr.msra.gmra.mrb[0].mxu0 %v404_v25 }
 0x106   : > { %v1110_v26 = vpop.f32.mrb[0].mxu0 }
 0x107   : > { %v497_v28 = vmul.f32 2.0, %v1110_v26  ;;  %v487_v29 = vpop.f32.mrb[1].mxu0 }
 0x108   : > { %v496_v31 = vmul.f32 2.0, %v487_v29 }
 0x109   : > { %v501_v32 = vadd.f32 %v499_v27, %v497_v28 }
 0x10a   : > { %v500_v33 = vadd.f32 %v498_v30, %v496_v31 }
 0x10b   : > { %503 = vst [vmem:[#allocation2 + $0x8] sm:$0xff] %v501_v32 }
 0x10c   : > { %502 = vst [vmem:[#allocation2] sm:$0xff] %v500_v33 }
 0x10d PF: > { %v506_v34 = vld [vmem:[%s1613_s0] sm:$0xff]  ;;  %v507_v35 = vld [vmem:[%s1613_s0 + $0x8] sm:$0xff]  ;;  %vm508_vm0 = vcmask 130048   ;;  %v693_v45 = vld [vmem:[%s1458_s14 + $0x10] sm:$0xff]  ;;  %p1578_p6 = scmp.eq.s32.totalorder %s988_s27, 2 }
 0x10e   : > { %v504_v36 = vld [vmem:[%s1463_s17] sm:$0xff]  ;;  %v1227_v37 = vpack.c.bf16 %v507_v35, %v506_v34  ;;  %v505_v39 = vld [vmem:[%s1463_s17 + $0x8] sm:$0xff]  ;;  %v694_v46 = vld [vmem:[%s1458_s14 + $0x18] sm:$0xff] }
 0x10f   : > { %1115 = vmatprep.mubr.msk.f32.mxu0 %vm508_vm0, %v504_v36  ;;  %v590_v38 = vld [vmem:[%s1468_s20] sm:$0xff]  ;;  %v692_v41 = vld [vmem:[%s1458_s14 + $0x8] sm:$0xff]  ;;  %v677_v49 = vld [vmem:[%s1453_s11 + $0x10] sm:$0xff]  ;;  %v1239_v51 = vpack.c.bf16 %v694_v46, %v693_v45 }
 0x110   : > { %1122 = vmatprep.mubr.msk.f32.mxu1 %vm508_vm0, %v590_v38  ;;  %v691_v40 = vld [vmem:[%s1458_s14] sm:$0xff]  ;;  %1228 = vmatprep.subr.bf16.mxu0 %v1227_v37  ;;  %v676_v44 = vld [vmem:[%s1453_s11 + $0x8] sm:$0xff]  ;;  %v678_v50 = vld [vmem:[%s1453_s11 + $0x18] sm:$0xff] }
 0x111   : > { %v675_v42 = vld [vmem:[%s1453_s11] sm:$0xff]  ;;  %1232 = vmatprep.subr.bf16.mxu1 %v1227_v37  ;;  %v1235_v43 = vpack.c.bf16 %v692_v41, %v691_v40  ;;  %1230 = vmatpush3.bf16.msra.mxu0 %v1227_v37  ;;  %v591_v47 = vld [vmem:[%s1468_s20 + $0x8] sm:$0xff]  ;;  %v1271_v52 = vpack.c.bf16 %v678_v50, %v677_v49  ;;  %v697_v59 = vld [vmem:[%s1458_s14 + $0x30] sm:$0xff] }
 0x112   : > { %1234 = vmatpush3.bf16.msra.mxu1 %v1227_v37  ;;  %v1267_v48 = vpack.c.bf16 %v676_v44, %v675_v42  ;;  %v695_v53 = vld [vmem:[%s1458_s14 + $0x20] sm:$0xff]  ;;  %v696_v54 = vld [vmem:[%s1458_s14 + $0x28] sm:$0xff]  ;;  %v698_v60 = vld [vmem:[%s1458_s14 + $0x38] sm:$0xff] }
 0x113   : > { %1236 = vmatprep.subr.bf16.mxu1 %v1235_v43  ;;  %v679_v55 = vld [vmem:[%s1453_s11 + $0x20] sm:$0xff]  ;;  %v680_v56 = vld [vmem:[%s1453_s11 + $0x28] sm:$0xff]  ;;  %v1243_v57 = vpack.c.bf16 %v696_v54, %v695_v53  ;;  %v681_v61 = vld [vmem:[%s1453_s11 + $0x30] sm:$0xff]  ;;  %v1247_v63 = vpack.c.bf16 %v698_v60, %v697_v59 }
 0x114   : > { %1268 = vmatprep.subr.bf16.mxu0 %v1267_v48  ;;  %1116 = vmatmul.mubr.msk.f32.vlgmr.msra.gmra.mrb[0].mxu0 %vm508_vm0, %v505_v39  ;;  %v1275_v58 = vpack.c.bf16 %v680_v56, %v679_v55  ;;  %v682_v62 = vld [vmem:[%s1453_s11 + $0x38] sm:$0xff]  ;;  %v699_v1 = vld [vmem:[%s1458_s14 + $0x40] sm:$0xff]  ;;  %v700_v2 = vld [vmem:[%s1458_s14 + $0x48] sm:$0xff] }
 0x115   : > { %1123 = vmatmul.mubr.msk.f32.vlgmr.msra.gmra.mrb[0].mxu1 %vm508_vm0, %v591_v47  ;;  %1270 = vmatpush3.bf16.msra.mxu0 %v1267_v48  ;;  %v1279_v0 = vpack.c.bf16 %v682_v62, %v681_v61  ;;  %v683_v3 = vld [vmem:[%s1453_s11 + $0x40] sm:$0xff]  ;;  %v684_v4 = vld [vmem:[%s1453_s11 + $0x48] sm:$0xff]  ;;  %v1251_v5 = vpack.c.bf16 %v700_v2, %v699_v1  ;;  %v701_v7 = vld [vmem:[%s1458_s14 + $0x50] sm:$0xff] }
 0x116   : > { %1238 = vmatpush3.bf16.msra.mxu1 %v1235_v43  ;;  %1272 = vmatprep.subr.bf16.mxu0 %v1271_v52  ;;  %v1283_v6 = vpack.c.bf16 %v684_v4, %v683_v3  ;;  %v702_v8 = vld [vmem:[%s1458_s14 + $0x58] sm:$0xff]  ;;  %v685_v9 = vld [vmem:[%s1453_s11 + $0x50] sm:$0xff]  ;;  %v703_v13 = vld [vmem:[%s1458_s14 + $0x60] sm:$0xff] }
 0x117   : > { %1240 = vmatprep.subr.bf16.mxu1 %v1239_v51  ;;  %v686_v10 = vld [vmem:[%s1453_s11 + $0x58] sm:$0xff]  ;;  %v1255_v11 = vpack.c.bf16 %v702_v8, %v701_v7  ;;  %v704_v14 = vld [vmem:[%s1458_s14 + $0x68] sm:$0xff]  ;;  %v687_v15 = vld [vmem:[%s1453_s11 + $0x60] sm:$0xff] }
 0x118   : > { %v1287_v12 = vpack.c.bf16 %v686_v10, %v685_v9  ;;  %v688_v16 = vld [vmem:[%s1453_s11 + $0x68] sm:$0xff]  ;;  %v1259_v17 = vpack.c.bf16 %v704_v14, %v703_v13  ;;  %v705_v19 = vld [vmem:[%s1458_s14 + $0x70] sm:$0xff]  ;;  %v706_v20 = vld [vmem:[%s1458_s14 + $0x78] sm:$0xff] }
 0x119   : > { %1274 = vmatpush3.bf16.msra.mxu0 %v1271_v52  ;;  %v1291_v18 = vpack.c.bf16 %v688_v16, %v687_v15  ;;  %v689_v21 = vld [vmem:[%s1453_s11 + $0x70] sm:$0xff]  ;;  %v690_v22 = vld [vmem:[%s1453_s11 + $0x78] sm:$0xff]  ;;  %v1263_v23 = vpack.c.bf16 %v706_v20, %v705_v19  ;;  %v674_v30 = vld [vmem:[#allocation2 + $0x8] sm:$0xff]  ;;  %s1388_s11 = smov [#allocation2]  }
 0x11a   : > { %1242 = vmatpush3.bf16.msra.mxu1 %v1239_v51  ;;  %1276 = vmatprep.subr.bf16.mxu0 %v1275_v58  ;;  %v1295_v24 = vpack.c.bf16 %v690_v22, %v689_v21  ;;  %s870_s14 = sshll.u32 %s1388_s11, 4  ;;  %v673_v34 = vld [vmem:[#allocation2] sm:$0xff]  ;;  %s871_s14 = int_to_ptr.vmem [resolvable:$true] %s870_s14 }
 0x11b   : > { %1244 = vmatprep.subr.bf16.mxu1 %v1243_v57  ;;  %s1334_s20 = scalar_lea.vmem %s871_s14, 256  ;;  %p1341_p10 = scmp.lt.s32.totalorder %s871_s14, %s871_s14 }
 0x11c   : > { %p1335_p7 = scmp.ne.s32.totalorder %s871_s14, %s1334_s20  ;;  %p1342_p11 = scmp.lt.s32.totalorder %s1334_s20, %s1334_s20 }
 0x11d   : > { %1278 = vmatpush3.bf16.msra.mxu0 %v1275_v58 }
 0x11e   : > { %1246 = vmatpush3.bf16.msra.mxu1 %v1243_v57  ;;  %1280 = vmatprep.subr.bf16.mxu0 %v1279_v0  ;;  %p1336_p8 = pnand %p1335_p7, %p1578_p6  ;;  %p1343_p12 = por %p1342_p11, %p1341_p10 }
 0x11f   : > { %1248 = vmatprep.subr.bf16.mxu1 %v1247_v63 }
 0x120   : > { %p1337_p9 = pneg %p1336_p8 }
 0x121   : > { %1282 = vmatpush3.bf16.msra.mxu0 %v1279_v0 }
 0x122   : > { %1250 = vmatpush3.bf16.msra.mxu1 %v1247_v63  ;;  %1284 = vmatprep.subr.bf16.mxu0 %v1283_v6  ;;  %p1344_p13 = pnand %p1343_p12, %p1337_p9 }
 0x123   : > { %1252 = vmatprep.subr.bf16.mxu1 %v1251_v5 }
 0x125   : > { %1286 = vmatpush3.bf16.msra.mxu0 %v1283_v6 }
 0x126   : > { %1254 = vmatpush3.bf16.msra.mxu1 %v1251_v5  ;;  %1288 = vmatprep.subr.bf16.mxu0 %v1287_v12 }
 0x127   : > { %1256 = vmatprep.subr.bf16.mxu1 %v1255_v11 }
 0x129   : > { %1290 = vmatpush3.bf16.msra.mxu0 %v1287_v12 }
 0x12a   : > { %1258 = vmatpush3.bf16.msra.mxu1 %v1255_v11  ;;  %1292 = vmatprep.subr.bf16.mxu0 %v1291_v18 }
 0x12b   : > { %1260 = vmatprep.subr.bf16.mxu1 %v1259_v17 }
 0x12d   : > { %1294 = vmatpush3.bf16.msra.mxu0 %v1291_v18 }
 0x12e   : > { %1262 = vmatpush3.bf16.msra.mxu1 %v1259_v17  ;;  %1296 = vmatprep.subr.bf16.mxu0 %v1295_v24 }
 0x12f   : > { %1264 = vmatprep.subr.bf16.mxu1 %v1263_v23 }
 0x131   : > { %1298 = vmatpush3.bf16.msra.mxu0 %v1295_v24 }
 0x132   : > { %1266 = vmatpush3.bf16.msra.mxu1 %v1263_v23 }
 0x1e7   : > { %v1117_v25 = vpop.f32.mrb[0].mxu0 }
 0x1e8   : > { %v1124_v26 = vpop.f32.mrb[0].mxu1  ;;  %v581_v27 = vpop.f32.mrb[1].mxu0 }
 0x1e9   : > { %v664_v28 = vpop.f32.mrb[1].mxu1  ;;  %1192 = vmatprep.mubr.f32.mxu0 %v581_v27 }
 0x1ea   : > { %1157 = vmatprep.mubr.f32.mxu1 %v664_v28  ;;  %1193 = vmatmul.mubr.f32.vlgmr.msra.gmra.mrb[2].mxu0 %v1117_v25 }
 0x1eb   : > { %1158 = vmatmul.mubr.f32.vlgmr.msra.gmra.mrb[2].mxu1 %v1124_v26 }
 0x2bd   : > { %v1194_v31 = vpop.f32.mrb[2].mxu0 }
 0x2be   : > { %v1159_v29 = vpop.f32.mrb[2].mxu1  ;;  %v848_v35 = vpop.f32.mrb[3].mxu0 }
 0x2bf   : > { %v854_v32 = vadd.f32 %v1194_v31, %v1159_v29  ;;  %v773_v33 = vpop.f32.mrb[3].mxu1 }
 0x2c0   : > { %v849_v36 = vadd.f32 %v848_v35, %v773_v33 }
 0x2c1   : > { %v858_v37 = vadd.f32 %v854_v32, %v674_v30 }
 0x2c2   : > { %v857_v38 = vadd.f32 %v849_v36, %v673_v34 }
 0x2c3   : > { %860 = vst [vmem:[#allocation2 + $0x8] sm:$0xff] %v858_v37 }
 0x2c4   : > { %859 = vst [vmem:[#allocation2] sm:$0xff] %v857_v38 }
 0x2c5   : > { %1347 = shalt.err (!%p1344_p13)
}
 0x2c6   : > { %s1348_s21 = scalar_lea.hbm %s1620_s7, 256 }
 0x2c7   : > { %p1349_p0 = scmp.ne.s32.totalorder %s1620_s7, %s1348_s21  ;;  %p1354_p3 = scmp.lt.u32.totalorder %s1348_s21, %s1620_s7 }
 0x2c9   : > { %p1350_p1 = pnand %p1349_p0, %p1578_p6 }
 0x2cb   : > { %p1351_p2 = pneg %p1350_p1 }
 0x2cd   : > { %p1356_p4 = pnand %p1354_p3, %p1351_p2 }
 0x2cf   : > { %1359 = shalt.err (!%p1356_p4)
}
 0x2d0   : > { %s1389_s9 = smov 128   ;;  %s1390_s10 = smov 8  }
 0x2d1   : > { %1302 = dma.vmem_to_hbm [thread:$0]  (%p1578_p6), %s871_s14, 256, %s1620_s7, [#allocation3], %s1389_s9, %s1389_s9, %s1390_s10  }
 0x2d2   : > { %1373 = dma.done.wait (%p1578_p6), [#allocation3], 256  }
 0x2d3   : > { %1375 = vsyncadd (%p1578_p6), [#allocation3], 4294967040 }
 0x2d4 PF: > { %s18_s26 = sadd.s32 1, %s1386_s26   ;;  %s1622_s24 = smov %s1382_s25 }
 0x2d5   : > { %p15_p5 = scmp.ge.s32.totalorder %s18_s26, 5   ;;  %s1623_s25 = smov %s1625_s28 }
 0x2d7   :  { %17 = sbr.rel (!%p15_p5) target bundleno = 2 (0x2), region = 93 }
 0x2de   :  { %886 = vsyncpa [#allocation3], 1 }
 0x2df   :  { %888 = vsyncpa [#allocation3 + $0x1], 1 }

</bundles_post_ra>
